<compile_context>
chip_gen: v6e
topology: v6e:2x2x1
jax: 0.10.0
libtpu: 0.0.40
codegen_flags: <defaults>
</compile_context>

<pallas_src>
import numpy as np
import jax
import jax.numpy as jnp
from jax.experimental import pallas as pl
from jax.experimental.pallas import tpu as pltpu

# ---------------- configuration (small, fixed) ----------------
N            = 256   # number of samples (points)
C_IN         = 32    # in_channels
OUT_CHANNELS = 4     # out_channels (3 color + 1 opacity)
NUM_BASIS    = 8
NUM_OP_BASIS = 8
NUM_TENSORS  = 2
K            = NUM_BASIS + NUM_OP_BASIS                      # per-tensor output channels
BD_FULL      = NUM_BASIS * (OUT_CHANNELS - 1) + NUM_OP_BASIS  # basis branch output dim
BD_COLOR     = NUM_BASIS * (OUT_CHANNELS - 1)                 # color-basis columns
Z            = BD_COLOR + NUM_OP_BASIS                        # 32: width of each fused block
W_FUSED      = (NUM_TENSORS + 1) * Z                          # 96: fused weight output columns

MAX_SINGLE_TILE = 1024   # run the whole batch in one grid step up to this many rows
BIG_TILE_N      = 512    # tile size if the batch grows (≈85% of HBM roofline vs ≈29% at 128)


# ---------------- Pallas kernel ----------------
def tensor_concat_kernel(x_ref, w_ref, b_ref, m_ref, o_ref):
    x = x_ref[...].astype(jnp.float32)                                        # (tn, C_IN)

    # One fused MXU dot: columns = [tensor0_ext | tensor1_ext | basis_ext], each Z=32 wide.
    y = jnp.dot(x, w_ref[...], preferred_element_type=jnp.float32) + b_ref[...]   # (tn, W_FUSED)

    # Product over the NUM_TENSORS factor blocks and the (ones-padded, channel-major) basis block.
    # Pure VPU work on 32 lanes; no reshape / tile / concat needed thanks to the fused weight layout.
    z = y[:, 0:Z]
    for t in range(1, NUM_TENSORS + 1):
        z = z * y[:, t * Z:(t + 1) * Z]                                       # (tn, Z)

    # Constant block-averaging contraction replaces the per-channel mean + concatenate epilogue.
    out = jnp.dot(z, m_ref[...], preferred_element_type=jnp.float32)          # (tn, OUT_CHANNELS)
    o_ref[...] = jax.nn.sigmoid(out).astype(o_ref.dtype)                      # out_layer = sigmoid


# ---------------- one-time parameter fusion (hoisted out of the per-call path) ----------------
def prepare_fused_params(w_tensors, b_tensors, w_basis_full, b_basis_full):
    """Call ONCE at parameter-load time. Returns (w_all, b_all, m) for tensor_concat_forward."""
    # channel-major permutation for the color-basis columns:
    #   fused col c*NUM_BASIS + b  <-  original col b*(OUT_CHANNELS-1) + c
    perm = np.array([b * (OUT_CHANNELS - 1) + c
                     for c in range(OUT_CHANNELS - 1)
                     for b in range(NUM_BASIS)], dtype=np.int32)
    # tensor-factor columns duplicated per color channel, then the opacity columns
    dup = np.array([b for _ in range(OUT_CHANNELS - 1) for b in range(NUM_BASIS)]
                   + [NUM_BASIS + b for b in range(NUM_OP_BASIS)], dtype=np.int32)   # (Z,)

    w_blocks, b_blocks = [], []
    for t in range(NUM_TENSORS):
        w_blocks.append(w_tensors[t][:, dup])                  # (C_IN, Z)
        b_blocks.append(b_tensors[t, 0][dup][None, :])         # (1, Z)
    # basis block: permuted color columns; zero weights / one bias for the all-ones opacity basis
    w_blocks.append(jnp.concatenate(
        [w_basis_full[:, :BD_COLOR][:, perm],
         jnp.zeros((C_IN, NUM_OP_BASIS), w_basis_full.dtype)], axis=1))
    b_blocks.append(jnp.concatenate(
        [b_basis_full[:, :BD_COLOR][:, perm],
         jnp.ones((1, NUM_OP_BASIS), b_basis_full.dtype)], axis=1))

    w_all = jnp.concatenate(w_blocks, axis=1)                  # (C_IN, W_FUSED)
    b_all = jnp.concatenate(b_blocks, axis=1)                  # (1, W_FUSED)

    # constant block-averaging matrix for the epilogue contraction
    m = np.zeros((Z, OUT_CHANNELS), np.float32)
    for c in range(OUT_CHANNELS - 1):
        m[c * NUM_BASIS:(c + 1) * NUM_BASIS, c] = 1.0 / NUM_BASIS
    m[BD_COLOR:, OUT_CHANNELS - 1] = 1.0 / NUM_OP_BASIS
    return w_all, b_all, jnp.asarray(m)


# ---------------- per-call wrapper ----------------
def tensor_concat_forward(x, w_all, b_all, m):
    """x: (N, C_IN); w_all: (C_IN, W_FUSED); b_all: (1, W_FUSED); m: (Z, OUT_CHANNELS)."""
    n = x.shape[0]
    if n <= MAX_SINGLE_TILE:
        tile_n = max(8, ((n + 7) // 8) * 8)      # single grid step, rows padded to a sublane multiple
    else:
        tile_n = BIG_TILE_N                       # large batches: 512-row tiles
    padded_n = ((n + tile_n - 1) // tile_n) * tile_n
    x_p = jnp.pad(x, ((0, padded_n - n), (0, 0))) if padded_n != n else x

    out = pl.pallas_call(
        tensor_concat_kernel,
        out_shape=jax.ShapeDtypeStruct((padded_n, OUT_CHANNELS), jnp.float32),
        grid=(padded_n // tile_n,),
        in_specs=[
            pl.BlockSpec((tile_n, C_IN), lambda i: (i, 0)),
            pl.BlockSpec((C_IN, W_FUSED), lambda i: (0, 0)),
            pl.BlockSpec((1, W_FUSED), lambda i: (0, 0)),
            pl.BlockSpec((Z, OUT_CHANNELS), lambda i: (0, 0)),
        ],
        out_specs=pl.BlockSpec((tile_n, OUT_CHANNELS), lambda i: (i, 0)),
        compiler_params=pltpu.CompilerParams(dimension_semantics=("parallel",)),
    )(x_p, w_all, b_all, m)
    return out[:n] if padded_n != n else out


# ---------------- pure-JAX reference (mirrors the module forward; unchanged) ----------------
def reference(x, w_tensors, b_tensors, w_basis_full, b_basis_full):
    outs = [x @ w_tensors[t] + b_tensors[t, 0] for t in range(NUM_TENSORS)]
    coeffs = jnp.stack(outs, -1).prod(-1)[..., None]                         # (N, K, 1)
    basis = x @ w_basis_full + b_basis_full[0]                               # (N, BD_FULL)
    color_basis = basis[:, :BD_COLOR].reshape(x.shape[0], NUM_BASIS, OUT_CHANNELS - 1)
    opacity_basis = jnp.ones((x.shape[0], NUM_OP_BASIS, 1), jnp.float32)
    color_coeffs = coeffs[:, :NUM_BASIS, :]
    opacity_coeffs = coeffs[:, NUM_BASIS:, :]
    color = jax.nn.sigmoid((color_coeffs * color_basis).mean(1))
    opacity = jax.nn.sigmoid((opacity_coeffs * opacity_basis).mean(1))
    return jnp.concatenate([color, opacity], -1)


if __name__ == "__main__":
    key = jax.random.PRNGKey(0)
    kx, kw, kbw, kbt, kbb = jax.random.split(key, 5)

    x = jax.random.normal(kx, (N, C_IN), jnp.float32)
    # deterministic parameter init (synthetic; no checkpoint load)
    w_tensors = 0.1 * jax.random.normal(kw, (NUM_TENSORS, C_IN, K), jnp.float32)
    b_tensors = 0.1 * jax.random.normal(kbt, (NUM_TENSORS, 1, K), jnp.float32)
    w_basis   = 0.1 * jax.random.normal(kbw, (C_IN, BD_FULL), jnp.float32)
    b_basis   = 0.1 * jax.random.normal(kbb, (1, BD_FULL), jnp.float32)

    # one-time fused-weight prep (parameter-load time, NOT per forward call)
    w_all, b_all, m = jax.block_until_ready(
        prepare_fused_params(w_tensors, b_tensors, w_basis, b_basis))

    out = tensor_concat_forward(x, w_all, b_all, m)
    out = jax.block_until_ready(out)

    ref = reference(x, w_tensors, b_tensors, w_basis, b_basis)
    np.testing.assert_allclose(np.asarray(out), np.asarray(ref), rtol=1e-5, atol=1e-5)

    print("KERNEL_OK")
</pallas_src>

<mosaic_0001>
module attributes {stable_mosaic.version = 11 : i64} {
  func.func @tensor_concat_kernel(%arg0: i32, %arg1: memref<256x32xf32, #tpu.memory_space<vmem>>, %arg2: memref<32x96xf32, #tpu.memory_space<vmem>>, %arg3: memref<1x96xf32, #tpu.memory_space<vmem>>, %arg4: memref<32x4xf32, #tpu.memory_space<vmem>>, %arg5: memref<256x4xf32, #tpu.memory_space<vmem>>) attributes {dimension_semantics = [#tpu.dimension_semantics<parallel>], iteration_bounds = array<i64: 1>, scalar_prefetch = 0 : i64, scratch_operands = 0 : i64, tpu.core_type = #tpu.core_type<tc>, window_params = [{transform_indices = @transform_0, window_bounds = array<i64: 256, 32>}, {pipeline_mode = #tpu.pipeline_mode<synchronous>, transform_indices = @transform_1, window_bounds = array<i64: 32, 96>}, {pipeline_mode = #tpu.pipeline_mode<synchronous>, transform_indices = @transform_2, window_bounds = array<i64: 1, 96>}, {pipeline_mode = #tpu.pipeline_mode<synchronous>, transform_indices = @transform_3, window_bounds = array<i64: 32, 4>}, {transform_indices = @transform_4, window_bounds = array<i64: 256, 4>}]} {
    %c0 = arith.constant 0 : index
    %c0_0 = arith.constant 0 : index
    %0 = vector.load %arg1[%c0, %c0_0] : memref<256x32xf32, #tpu.memory_space<vmem>>, vector<256x32xf32>
    %c0_1 = arith.constant 0 : index
    %c0_2 = arith.constant 0 : index
    %1 = vector.load %arg2[%c0_1, %c0_2] : memref<32x96xf32, #tpu.memory_space<vmem>>, vector<32x96xf32>
    %cst = arith.constant dense<0.000000e+00> : vector<256x96xf32>
    %2 = tpu.matmul %0, %1, %cst {dimension_numbers = #tpu.dot_dimension_numbers<[1], [0], [0], [1], [0, 0, 1, 1], [], []>} : vector<256x32xf32>, vector<32x96xf32>, vector<256x96xf32> -> vector<256x96xf32>
    %c0_3 = arith.constant 0 : index
    %c0_4 = arith.constant 0 : index
    %3 = vector.load %arg3[%c0_3, %c0_4] : memref<1x96xf32, #tpu.memory_space<vmem>>, vector<1x96xf32>
    %4 = vector.broadcast %3 : vector<1x96xf32> to vector<256x96xf32>
    %5 = arith.addf %2, %4 : vector<256x96xf32>
    %6 = vector.extract_strided_slice %5 {offsets = [0, 0], sizes = [256, 32], strides = [1, 1]} : vector<256x96xf32> to vector<256x32xf32>
    %7 = vector.extract_strided_slice %5 {offsets = [0, 32], sizes = [256, 32], strides = [1, 1]} : vector<256x96xf32> to vector<256x32xf32>
    %8 = arith.mulf %6, %7 : vector<256x32xf32>
    %9 = vector.extract_strided_slice %5 {offsets = [0, 64], sizes = [256, 32], strides = [1, 1]} : vector<256x96xf32> to vector<256x32xf32>
    %10 = arith.mulf %8, %9 : vector<256x32xf32>
    %c0_5 = arith.constant 0 : index
    %c0_6 = arith.constant 0 : index
    %11 = vector.load %arg4[%c0_5, %c0_6] : memref<32x4xf32, #tpu.memory_space<vmem>>, vector<32x4xf32>
    %cst_7 = arith.constant dense<0.000000e+00> : vector<256x4xf32>
    %12 = tpu.matmul %10, %11, %cst_7 {dimension_numbers = #tpu.dot_dimension_numbers<[1], [0], [0], [1], [0, 0, 1, 1], [], []>} : vector<256x32xf32>, vector<32x4xf32>, vector<256x4xf32> -> vector<256x4xf32>
    %13 = arith.negf %12 : vector<256x4xf32>
    %14 = math.exp %13 : vector<256x4xf32>
    %cst_8 = arith.constant 1.000000e+00 : f32
    %15 = vector.broadcast %cst_8 : f32 to vector<256x4xf32>
    %16 = arith.addf %15, %14 : vector<256x4xf32>
    %17 = arith.divf %15, %16 : vector<256x4xf32>
    %c0_9 = arith.constant 0 : index
    %c0_10 = arith.constant 0 : index
    %18 = vector.load %arg5[%c0_9, %c0_10] : memref<256x4xf32, #tpu.memory_space<vmem>>, vector<256x4xf32>
    tpu.vector_store %arg5[%c0_9, %c0_10], %17 {strides = array<i32>} : memref<256x4xf32, #tpu.memory_space<vmem>>, vector<256x4xf32>,
    return
  }
  func.func @transform_0(%arg0: i32) -> (i32, i32) {
    %c0_i32 = arith.constant 0 : i32
    %c0_i32_0 = arith.constant 0 : i32
    return %arg0, %c0_i32 : i32, i32
  }
  func.func @transform_1(%arg0: i32) -> (i32, i32) {
    %c0_i32 = arith.constant 0 : i32
    %c0_i32_0 = arith.constant 0 : i32
    %c0_i32_1 = arith.constant 0 : i32
    return %c0_i32, %c0_i32_0 : i32, i32
  }
  func.func @transform_2(%arg0: i32) -> (i32, i32) {
    %c0_i32 = arith.constant 0 : i32
    %c0_i32_0 = arith.constant 0 : i32
    %c0_i32_1 = arith.constant 0 : i32
    return %c0_i32, %c0_i32_0 : i32, i32
  }
  func.func @transform_3(%arg0: i32) -> (i32, i32) {
    %c0_i32 = arith.constant 0 : i32
    %c0_i32_0 = arith.constant 0 : i32
    %c0_i32_1 = arith.constant 0 : i32
    return %c0_i32, %c0_i32_0 : i32, i32
  }
  func.func @transform_4(%arg0: i32) -> (i32, i32) {
    %c0_i32 = arith.constant 0 : i32
    %c0_i32_0 = arith.constant 0 : i32
    return %arg0, %c0_i32 : i32, i32
  }
}

</mosaic_0001>

<bundles_post_ra>
// kernel: tpu_custom_call.1
= control target key start
LH: loop header
LB: loop body
LE: loop exit
PB: predicated region body
PF: predicated region fallthrough
CT: control target
= control target key end

     0   :  { %vm60_vm0 = vcmask 261120   ;;  %s1635_s15 = smov 64   ;;  %s1636_s16 = smov 96   ;;  %vm1187_vm1 = vcmask 31744   ;;  %s2235_s1 = inlined_call_operand.vmem [shape: f32[32,96], index: 1, kind: input, shape index: {}]   ;;  %s2236_s0 = inlined_call_operand.vmem [shape: f32[256,32], index: 0, kind: input, shape index: {}]   ;;  %s2237_s3 = inlined_call_operand.vmem [shape: f32[32,4], index: 3, kind: input, shape index: {}]   ;;  %s2238_s2 = inlined_call_operand.vmem [shape: f32[1,96], index: 2, kind: input, shape index: {}]   ;;  %s2239_s4 = inlined_call_operand.vmem [shape: f32[256,4], index: 4, kind: output, shape index: {}]  }
   0x1   :  { %v52_v0 = vld [vmem:[%s2235_s1 + $0x18] sm:$0xff]  ;;  %v51_v1 = vld [vmem:[%s2235_s1 + $0x10] sm:$0xff]  ;;  %v17_v2 = vld [vmem:[%s2236_s0] sm:$0xff] }
   0x2   :  { %1393 = vmatprep.subr.mxu0 %v52_v0  ;;  %v50_v3 = vld [vmem:[%s2235_s1 + $0x8] sm:$0xff]  ;;  %1401 = vmatprep.mubr.msk.f32.mxu0 %vm60_vm0, %v17_v2  ;;  %v49_v4 = vld [vmem:[%s2235_s1] sm:$0xff]  ;;  %v19_v6 = vld [vmem:[%s2236_s0 + $0x10] sm:$0xff] }
   0x3   :  { %1394 = vmatpush3.msra.mxu0 %v52_v0  ;;  %v18_v5 = vld [vmem:[%s2236_s0 + $0x8] sm:$0xff]  ;;  %v20_v7 = vld [vmem:[%s2236_s0 + $0x18] sm:$0xff]  ;;  %v21_v8 = vld [vmem:[%s2236_s0 + $0x20] sm:$0xff] }
   0x4   :  { %1395 = vmatprep.subr.mxu0 %v51_v1  ;;  %v22_v9 = vld [vmem:[%s2236_s0 + $0x28] sm:$0xff]  ;;  %v23_v10 = vld [vmem:[%s2236_s0 + $0x30] sm:$0xff]  ;;  %v24_v11 = vld [vmem:[%s2236_s0 + $0x38] sm:$0xff] }
   0x5   :  { %1396 = vmatpush3.msra.mxu0 %v51_v1  ;;  %v25_v12 = vld [vmem:[%s2236_s0 + $0x40] sm:$0xff]  ;;  %v26_v13 = vld [vmem:[%s2236_s0 + $0x48] sm:$0xff]  ;;  %v27_v14 = vld [vmem:[%s2236_s0 + $0x50] sm:$0xff] }
   0x6   :  { %1397 = vmatprep.subr.mxu0 %v50_v3  ;;  %v28_v15 = vld [vmem:[%s2236_s0 + $0x58] sm:$0xff]  ;;  %v29_v16 = vld [vmem:[%s2236_s0 + $0x60] sm:$0xff]  ;;  %v30_v17 = vld [vmem:[%s2236_s0 + $0x68] sm:$0xff] }
   0x7   :  { %1398 = vmatpush3.msra.mxu0 %v50_v3  ;;  %v31_v18 = vld [vmem:[%s2236_s0 + $0x70] sm:$0xff]  ;;  %v32_v19 = vld [vmem:[%s2236_s0 + $0x78] sm:$0xff]  ;;  %v33_v20 = vld [vmem:[%s2236_s0 + $0x80] sm:$0xff] }
   0x8   :  { %1399 = vmatprep.subr.mxu0 %v49_v4  ;;  %v34_v21 = vld [vmem:[%s2236_s0 + $0x88] sm:$0xff]  ;;  %v35_v22 = vld [vmem:[%s2236_s0 + $0x90] sm:$0xff]  ;;  %v36_v23 = vld [vmem:[%s2236_s0 + $0x98] sm:$0xff] }
   0x9   :  { %1400 = vmatpush3.msra.mxu0 %v49_v4  ;;  %v37_v24 = vld [vmem:[%s2236_s0 + $0xa0] sm:$0xff]  ;;  %v38_v25 = vld [vmem:[%s2236_s0 + $0xa8] sm:$0xff]  ;;  %v39_v26 = vld [vmem:[%s2236_s0 + $0xb0] sm:$0xff] }
   0xa   :  { %1402 = vmatmul.mubr.msk.f32.vlgmr.msra.gmra.mxu0 %vm60_vm0, %v18_v5  ;;  %v40_v27 = vld [vmem:[%s2236_s0 + $0xb8] sm:$0xff]  ;;  %v41_v28 = vld [vmem:[%s2236_s0 + $0xc0] sm:$0xff]  ;;  %v42_v29 = vld [vmem:[%s2236_s0 + $0xc8] sm:$0xff] }
   0xb   :  { %1404 = vmatprep.mubr.msk.f32.mxu0 %vm60_vm0, %v19_v6  ;;  %v43_v30 = vld [vmem:[%s2236_s0 + $0xd0] sm:$0xff]  ;;  %v44_v31 = vld [vmem:[%s2236_s0 + $0xd8] sm:$0xff]  ;;  %v45_v32 = vld [vmem:[%s2236_s0 + $0xe0] sm:$0xff] }
   0xc   :  { %v46_v33 = vld [vmem:[%s2236_s0 + $0xe8] sm:$0xff]  ;;  %v47_v34 = vld [vmem:[%s2236_s0 + $0xf0] sm:$0xff]  ;;  %v48_v35 = vld [vmem:[%s2236_s0 + $0xf8] sm:$0xff] }
   0xd   :  { %v673_v36 = vld [vmem:[%s2237_s3 + $0x18] sm:$0xff]  ;;  %v672_v37 = vld [vmem:[%s2237_s3 + $0x10] sm:$0xff]  ;;  %v671_v38 = vld [vmem:[%s2237_s3 + $0x8] sm:$0xff] }
   0xe   :  { %1405 = vmatmul.mubr.msk.f32.gmra.mxu0 %vm60_vm0, %v20_v7  ;;  %1449 = vmatprep.subr.mxu1 %v673_v36  ;;  %v670_v39 = vld [vmem:[%s2237_s3] sm:$0xff] }
   0xf   :  { %1407 = vmatprep.mubr.msk.f32.mxu0 %vm60_vm0, %v21_v8  ;;  %1450 = vmatpush3.msra.mxu1 %v673_v36  ;;  %v1817_v40 = vld [vmem:[%s2238_s2] ss:$0 sm:$0xff] }
  0x10   :  { %1451 = vmatprep.subr.mxu1 %v672_v37 }
  0x11   :  { %1452 = vmatpush3.msra.mxu1 %v672_v37 }
  0x12   :  { %1408 = vmatmul.mubr.msk.f32.gmra.mxu0 %vm60_vm0, %v22_v9  ;;  %1453 = vmatprep.subr.mxu1 %v671_v38 }
  0x13   :  { %1410 = vmatprep.mubr.msk.f32.mxu0 %vm60_vm0, %v23_v10  ;;  %1454 = vmatpush3.msra.mxu1 %v671_v38 }
  0x14   :  { %1455 = vmatprep.subr.mxu1 %v670_v39 }
  0x15   :  { %1456 = vmatpush3.msra.mxu1 %v670_v39 }
  0x16   :  { %1411 = vmatmul.mubr.msk.f32.gmra.mxu0 %vm60_vm0, %v24_v11 }
  0x17   :  { %1413 = vmatprep.mubr.msk.f32.mxu0 %vm60_vm0, %v25_v12 }
  0x1a   :  { %1414 = vmatmul.mubr.msk.f32.gmra.mxu0 %vm60_vm0, %v26_v13 }
  0x1b   :  { %1416 = vmatprep.mubr.msk.f32.mxu0 %vm60_vm0, %v27_v14 }
  0x1e   :  { %1417 = vmatmul.mubr.msk.f32.gmra.mxu0 %vm60_vm0, %v28_v15 }
  0x1f   :  { %1419 = vmatprep.mubr.msk.f32.mxu0 %vm60_vm0, %v29_v16 }
  0x22   :  { %1420 = vmatmul.mubr.msk.f32.gmra.mxu0 %vm60_vm0, %v30_v17 }
  0x23   :  { %1422 = vmatprep.mubr.msk.f32.mxu0 %vm60_vm0, %v31_v18 }
  0x26   :  { %1423 = vmatmul.mubr.msk.f32.gmra.mxu0 %vm60_vm0, %v32_v19 }
  0x27   :  { %1425 = vmatprep.mubr.msk.f32.mxu0 %vm60_vm0, %v33_v20 }
  0x2a   :  { %1426 = vmatmul.mubr.msk.f32.gmra.mxu0 %vm60_vm0, %v34_v21 }
  0x2b   :  { %1428 = vmatprep.mubr.msk.f32.mxu0 %vm60_vm0, %v35_v22 }
  0x2e   :  { %1429 = vmatmul.mubr.msk.f32.gmra.mxu0 %vm60_vm0, %v36_v23 }
  0x2f   :  { %1431 = vmatprep.mubr.msk.f32.mxu0 %vm60_vm0, %v37_v24 }
  0x32   :  { %1432 = vmatmul.mubr.msk.f32.gmra.mxu0 %vm60_vm0, %v38_v25 }
  0x33   :  { %1434 = vmatprep.mubr.msk.f32.mxu0 %vm60_vm0, %v39_v26 }
  0x36   :  { %1435 = vmatmul.mubr.msk.f32.gmra.mxu0 %vm60_vm0, %v40_v27 }
  0x37   :  { %1437 = vmatprep.mubr.msk.f32.mxu0 %vm60_vm0, %v41_v28 }
  0x3a   :  { %1438 = vmatmul.mubr.msk.f32.gmra.mxu0 %vm60_vm0, %v42_v29 }
  0x3b   :  { %1440 = vmatprep.mubr.msk.f32.mxu0 %vm60_vm0, %v43_v30 }
  0x3e   :  { %1441 = vmatmul.mubr.msk.f32.gmra.mxu0 %vm60_vm0, %v44_v31 }
  0x3f   :  { %1443 = vmatprep.mubr.msk.f32.mxu0 %vm60_vm0, %v45_v32 }
  0x42   :  { %1444 = vmatmul.mubr.msk.f32.gmra.mxu0 %vm60_vm0, %v46_v33 }
  0x43   :  { %1446 = vmatprep.mubr.msk.f32.mxu0 %vm60_vm0, %v47_v34 }
  0x46   :  { %1447 = vmatmul.mubr.msk.f32.gmra.mxu0 %vm60_vm0, %v48_v35 }
  0xca   :  { %v1403_v41 = vpop.f32.mrf.mxu0 }
  0xcb   :  { %v1820_v42 = vadd.f32 %v1403_v41, %v1817_v40 }
  0xcc   :  { %v223_v43 = vpop.f32.mrf.mxu0 }
  0xcd   :  { %544 = vrot.lane.b32.xlu1 %v1820_v42, %s1635_s15  ;;  %416 = vrot.lane.b32.xlu0 %v1820_v42, %s1636_s16  ;;  %v1827_v45 = vadd.f32 %v1817_v40, %v223_v43 }
  0xce   :  { %v1406_v44 = vpop.f32.mrf.mxu0 }
  0xcf   :  { %v1834_v47 = vadd.f32 %v1406_v44, %v1817_v40 }
  0xd0   :  { %v233_v46 = vpop.f32.mrf.mxu0 }
  0xd1   :  { %542 = vrot.lane.b32.xlu1 %v1827_v45, %s1635_s15  ;;  %414 = vrot.lane.b32.xlu0 %v1827_v45, %s1636_s16  ;;  %v1837_v48 = vadd.f32 %v1817_v40, %v233_v46 }
  0xd2   :  { %v1409_v49 = vpop.f32.mrf.mxu0 }
  0xd3   :  { %v1848_v51 = vadd.f32 %v1409_v49, %v1817_v40 }
  0xd4   :  { %v243_v50 = vpop.f32.mrf.mxu0 }
  0xd5   :  { %420 = vrot.lane.b32.xlu1 %v1834_v47, %s1636_s16  ;;  %418 = vrot.lane.b32.xlu0 %v1837_v48, %s1636_s16  ;;  %v1851_v52 = vadd.f32 %v1817_v40, %v243_v50 }
  0xd6   :  { %v1412_v53 = vpop.f32.mrf.mxu0 }
  0xd7   :  { %v1862_v55 = vadd.f32 %v1412_v53, %v1817_v40 }
  0xd8   :  { %v253_v54 = vpop.f32.mrf.mxu0 }
  0xd9   :  { %548 = vrot.lane.b32.xlu1 %v1834_v47, %s1635_s15  ;;  %546 = vrot.lane.b32.xlu0 %v1837_v48, %s1635_s15  ;;  %v1865_v56 = vadd.f32 %v1817_v40, %v253_v54 }
  0xda   :  { %v1415_v57 = vpop.f32.mrf.mxu0 }
  0xdb   :  { %v1876_v59 = vadd.f32 %v1415_v57, %v1817_v40 }
  0xdc   :  { %v263_v58 = vpop.f32.mrf.mxu0 }
  0xdd   :  { %424 = vrot.lane.b32.xlu1 %v1848_v51, %s1636_s16  ;;  %422 = vrot.lane.b32.xlu0 %v1851_v52, %s1636_s16  ;;  %v1879_v60 = vadd.f32 %v1817_v40, %v263_v58 }
  0xde   :  { %v1418_v61 = vpop.f32.mrf.mxu0 }
  0xdf   :  { %v1890_v63 = vadd.f32 %v1418_v61, %v1817_v40 }
  0xe0   :  { %v273_v62 = vpop.f32.mrf.mxu0 }
  0xe1   :  { %552 = vrot.lane.b32.xlu1 %v1848_v51, %s1635_s15  ;;  %550 = vrot.lane.b32.xlu0 %v1851_v52, %s1635_s15  ;;  %v1893_v0 = vadd.f32 %v1817_v40, %v273_v62 }
  0xe2   :  { %v1421_v1 = vpop.f32.mrf.mxu0 }
  0xe3   :  { %v1904_v3 = vadd.f32 %v1421_v1, %v1817_v40 }
  0xe4   :  { %v283_v2 = vpop.f32.mrf.mxu0 }
  0xe5   :  { %428 = vrot.lane.b32.xlu1 %v1862_v55, %s1636_s16  ;;  %426 = vrot.lane.b32.xlu0 %v1865_v56, %s1636_s16  ;;  %v1907_v4 = vadd.f32 %v1817_v40, %v283_v2 }
  0xe6   :  { %v1424_v5 = vpop.f32.mrf.mxu0 }
  0xe7   :  { %v1918_v7 = vadd.f32 %v1424_v5, %v1817_v40 }
  0xe8   :  { %v293_v6 = vpop.f32.mrf.mxu0 }
  0xe9   :  { %556 = vrot.lane.b32.xlu1 %v1862_v55, %s1635_s15  ;;  %554 = vrot.lane.b32.xlu0 %v1865_v56, %s1635_s15  ;;  %v1921_v8 = vadd.f32 %v1817_v40, %v293_v6 }
  0xea   :  { %v1427_v9 = vpop.f32.mrf.mxu0 }
  0xeb   :  { %v1932_v11 = vadd.f32 %v1427_v9, %v1817_v40 }
  0xec   :  { %v303_v10 = vpop.f32.mrf.mxu0 }
  0xed   :  { %432 = vrot.lane.b32.xlu1 %v1876_v59, %s1636_s16  ;;  %430 = vrot.lane.b32.xlu0 %v1879_v60, %s1636_s16  ;;  %v1935_v12 = vadd.f32 %v1817_v40, %v303_v10 }
  0xee   :  { %v1430_v13 = vpop.f32.mrf.mxu0 }
  0xef   :  { %v1946_v15 = vadd.f32 %v1430_v13, %v1817_v40 }
  0xf0   :  { %v313_v14 = vpop.f32.mrf.mxu0 }
  0xf1   :  { %560 = vrot.lane.b32.xlu1 %v1876_v59, %s1635_s15  ;;  %558 = vrot.lane.b32.xlu0 %v1879_v60, %s1635_s15  ;;  %v1949_v16 = vadd.f32 %v1817_v40, %v313_v14 }
  0xf2   :  { %v1433_v17 = vpop.f32.mrf.mxu0 }
  0xf3   :  { %v1960_v19 = vadd.f32 %v1433_v17, %v1817_v40 }
  0xf4   :  { %v323_v18 = vpop.f32.mrf.mxu0 }
  0xf5   :  { %436 = vrot.lane.b32.xlu1 %v1890_v63, %s1636_s16  ;;  %434 = vrot.lane.b32.xlu0 %v1893_v0, %s1636_s16  ;;  %v1963_v20 = vadd.f32 %v1817_v40, %v323_v18 }
  0xf6   :  { %v1436_v21 = vpop.f32.mrf.mxu0 }
  0xf7   :  { %v1974_v23 = vadd.f32 %v1436_v21, %v1817_v40 }
  0xf8   :  { %v333_v22 = vpop.f32.mrf.mxu0 }
  0xf9   :  { %564 = vrot.lane.b32.xlu1 %v1890_v63, %s1635_s15  ;;  %562 = vrot.lane.b32.xlu0 %v1893_v0, %s1635_s15  ;;  %v1977_v24 = vadd.f32 %v1817_v40, %v333_v22 }
  0xfa   :  { %v1439_v25 = vpop.f32.mrf.mxu0 }
  0xfb   :  { %v1988_v27 = vadd.f32 %v1439_v25, %v1817_v40 }
  0xfc   :  { %v343_v26 = vpop.f32.mrf.mxu0 }
  0xfd   :  { %440 = vrot.lane.b32.xlu1 %v1904_v3, %s1636_s16  ;;  %438 = vrot.lane.b32.xlu0 %v1907_v4, %s1636_s16  ;;  %v1991_v28 = vadd.f32 %v1817_v40, %v343_v26 }
  0xfe   :  { %v1442_v29 = vpop.f32.mrf.mxu0 }
  0xff   :  { %v2002_v31 = vadd.f32 %v1442_v29, %v1817_v40 }
 0x100   :  { %v353_v30 = vpop.f32.mrf.mxu0 }
 0x101   :  { %568 = vrot.lane.b32.xlu1 %v1904_v3, %s1635_s15  ;;  %566 = vrot.lane.b32.xlu0 %v1907_v4, %s1635_s15  ;;  %v2005_v32 = vadd.f32 %v1817_v40, %v353_v30 }
 0x102   :  { %v1445_v33 = vpop.f32.mrf.mxu0 }
 0x103   :  { %v2016_v35 = vadd.f32 %v1445_v33, %v1817_v40 }
 0x104   :  { %v363_v34 = vpop.f32.mrf.mxu0 }
 0x105   :  { %444 = vrot.lane.b32.xlu1 %v1918_v7, %s1636_s16  ;;  %442 = vrot.lane.b32.xlu0 %v1921_v8, %s1636_s16  ;;  %v2019_v36 = vadd.f32 %v1817_v40, %v363_v34 }
 0x106   :  { %v1448_v37 = vpop.f32.mrf.mxu0 }
 0x107   :  { %v2030_v43 = vadd.f32 %v1448_v37, %v1817_v40 }
 0x108   :  { %v373_v41 = vpop.f32.mrf.mxu0 }
 0x109   :  { %572 = vrot.lane.b32.xlu1 %v1918_v7, %s1635_s15  ;;  %570 = vrot.lane.b32.xlu0 %v1921_v8, %s1635_s15  ;;  %v2033_v44 = vadd.f32 %v1817_v40, %v373_v41 }
 0x10d   :  { %448 = vrot.lane.b32.xlu1 %v1932_v11, %s1636_s16  ;;  %446 = vrot.lane.b32.xlu0 %v1935_v12, %s1636_s16 }
 0x111   :  { %576 = vrot.lane.b32.xlu1 %v1932_v11, %s1635_s15  ;;  %574 = vrot.lane.b32.xlu0 %v1935_v12, %s1635_s15 }
 0x115   :  { %452 = vrot.lane.b32.xlu1 %v1946_v15, %s1636_s16  ;;  %450 = vrot.lane.b32.xlu0 %v1949_v16, %s1636_s16 }
 0x119   :  { %580 = vrot.lane.b32.xlu1 %v1946_v15, %s1635_s15  ;;  %578 = vrot.lane.b32.xlu0 %v1949_v16, %s1635_s15 }
 0x11d   :  { %456 = vrot.lane.b32.xlu1 %v1960_v19, %s1636_s16  ;;  %454 = vrot.lane.b32.xlu0 %v1963_v20, %s1636_s16 }
 0x121   :  { %584 = vrot.lane.b32.xlu1 %v1960_v19, %s1635_s15  ;;  %582 = vrot.lane.b32.xlu0 %v1963_v20, %s1635_s15 }
 0x125   :  { %460 = vrot.lane.b32.xlu1 %v1974_v23, %s1636_s16  ;;  %458 = vrot.lane.b32.xlu0 %v1977_v24, %s1636_s16 }
 0x129   :  { %588 = vrot.lane.b32.xlu1 %v1974_v23, %s1635_s15  ;;  %586 = vrot.lane.b32.xlu0 %v1977_v24, %s1635_s15 }
 0x12d   :  { %464 = vrot.lane.b32.xlu1 %v1988_v27, %s1636_s16  ;;  %462 = vrot.lane.b32.xlu0 %v1991_v28, %s1636_s16 }
 0x131   :  { %592 = vrot.lane.b32.xlu1 %v1988_v27, %s1635_s15  ;;  %590 = vrot.lane.b32.xlu0 %v1991_v28, %s1635_s15 }
 0x135   :  { %468 = vrot.lane.b32.xlu1 %v2002_v31, %s1636_s16  ;;  %466 = vrot.lane.b32.xlu0 %v2005_v32, %s1636_s16 }
 0x139   :  { %596 = vrot.lane.b32.xlu1 %v2002_v31, %s1635_s15  ;;  %594 = vrot.lane.b32.xlu0 %v2005_v32, %s1635_s15 }
 0x13d   :  { %472 = vrot.lane.b32.xlu1 %v2016_v35, %s1636_s16  ;;  %470 = vrot.lane.b32.xlu0 %v2019_v36, %s1636_s16 }
 0x13f   :  { %v545_v38 = vpop.permute.xlu1 %544  ;;  %v417_v39 = vpop.permute.xlu0 %416 }
 0x140   :  { %v511_v50 = vmul.f32 %v417_v39, %v1820_v42 }
 0x141   :  { %600 = vrot.lane.b32.xlu1 %v2016_v35, %s1635_s15  ;;  %598 = vrot.lane.b32.xlu0 %v2019_v36, %s1635_s15 }
 0x142   :  { %v639_v61 = vmul.f32 %v545_v38, %v511_v50 }
 0x143   :  { %v543_v46 = vpop.permute.xlu1 %542  ;;  %v415_v49 = vpop.permute.xlu0 %414 }
 0x144   :  { %v510_v53 = vmul.f32 %v415_v49, %v1827_v45 }
 0x145   :  { %476 = vrot.lane.b32.xlu1 %v2030_v43, %s1636_s16  ;;  %474 = vrot.lane.b32.xlu0 %v2033_v44, %s1636_s16 }
 0x146   :  { %v638_v54 = vmul.f32 %v543_v46, %v510_v53 }
 0x147   :  { %v421_v57 = vpop.permute.xlu1 %420  ;;  %v419_v58 = vpop.permute.xlu0 %418 }
 0x148   :  { %1457 = vmatprep.mubr.msk.f32.mxu1 %vm60_vm0, %v638_v54  ;;  %v513_v40 = vmul.f32 %v421_v57, %v1834_v47  ;;  %v512_v42 = vmul.f32 %v419_v58, %v1837_v48 }
 0x149   :  { %604 = vrot.lane.b32.xlu1 %v2030_v43, %s1635_s15  ;;  %602 = vrot.lane.b32.xlu0 %v2033_v44, %s1635_s15 }
 0x14a   :  { %1458 = vmatmul.mubr.msk.f32.vlgmr.msra.gmra.mxu1 %vm60_vm0, %v639_v61 }
 0x14b   :  { %v549_v45 = vpop.permute.xlu1 %548  ;;  %v547_v62 = vpop.permute.xlu0 %546 }
 0x14c   :  { %v641_v1 = vmul.f32 %v549_v45, %v513_v40  ;;  %v640_v2 = vmul.f32 %v547_v62, %v512_v42 }
 0x14e   :  { %1460 = vmatprep.mubr.msk.f32.mxu1 %vm60_vm0, %v640_v2 }
 0x14f   :  { %v425_v5 = vpop.permute.xlu1 %424  ;;  %1461 = vmatmul.mubr.msk.f32.gmra.mxu1 %vm60_vm0, %v641_v1  ;;  %v423_v6 = vpop.permute.xlu0 %422 }
 0x150   :  { %v515_v9 = vmul.f32 %v425_v5, %v1848_v51  ;;  %v514_v10 = vmul.f32 %v423_v6, %v1851_v52 }
 0x153   :  { %v553_v13 = vpop.permute.xlu1 %552  ;;  %v551_v47 = vpop.permute.xlu0 %550 }
 0x154   :  { %v643_v14 = vmul.f32 %v553_v13, %v515_v9  ;;  %v642_v48 = vmul.f32 %v551_v47, %v514_v10 }
 0x156   :  { %1463 = vmatprep.mubr.msk.f32.mxu1 %vm60_vm0, %v642_v48 }
 0x157   :  { %v429_v17 = vpop.permute.xlu1 %428  ;;  %1464 = vmatmul.mubr.msk.f32.gmra.mxu1 %vm60_vm0, %v643_v14  ;;  %v427_v18 = vpop.permute.xlu0 %426 }
 0x158   :  { %v517_v21 = vmul.f32 %v429_v17, %v1862_v55  ;;  %v516_v22 = vmul.f32 %v427_v18, %v1865_v56 }
 0x15b   :  { %v557_v25 = vpop.permute.xlu1 %556  ;;  %v555_v26 = vpop.permute.xlu0 %554 }
 0x15c   :  { %v645_v29 = vmul.f32 %v557_v25, %v517_v21  ;;  %v644_v51 = vmul.f32 %v555_v26, %v516_v22 }
 0x15e   :  { %1466 = vmatprep.mubr.msk.f32.mxu1 %vm60_vm0, %v644_v51 }
 0x15f   :  { %v433_v52 = vpop.permute.xlu1 %432  ;;  %1467 = vmatmul.mubr.msk.f32.gmra.mxu1 %vm60_vm0, %v645_v29  ;;  %v431_v30 = vpop.permute.xlu0 %430 }
 0x160   :  { %v519_v33 = vmul.f32 %v433_v52, %v1876_v59  ;;  %v518_v34 = vmul.f32 %v431_v30, %v1879_v60 }
 0x163   :  { %v561_v37 = vpop.permute.xlu1 %560  ;;  %v559_v38 = vpop.permute.xlu0 %558 }
 0x164   :  { %v647_v39 = vmul.f32 %v561_v37, %v519_v33  ;;  %v646_v55 = vmul.f32 %v559_v38, %v518_v34 }
 0x166   :  { %1469 = vmatprep.mubr.msk.f32.mxu1 %vm60_vm0, %v646_v55 }
 0x167   :  { %v437_v56 = vpop.permute.xlu1 %436  ;;  %1470 = vmatmul.mubr.msk.f32.gmra.mxu1 %vm60_vm0, %v647_v39  ;;  %v435_v41 = vpop.permute.xlu0 %434 }
 0x168   :  { %v521_v46 = vmul.f32 %v437_v56, %v1890_v63  ;;  %v520_v49 = vmul.f32 %v435_v41, %v1893_v0 }
 0x16b   :  { %v565_v50 = vpop.permute.xlu1 %564  ;;  %v563_v53 = vpop.permute.xlu0 %562 }
 0x16c   :  { %v649_v54 = vmul.f32 %v565_v50, %v521_v46  ;;  %v648_v59 = vmul.f32 %v563_v53, %v520_v49 }
 0x16e   :  { %1472 = vmatprep.mubr.msk.f32.mxu1 %vm60_vm0, %v648_v59 }
 0x16f   :  { %v441_v60 = vpop.permute.xlu1 %440  ;;  %1473 = vmatmul.mubr.msk.f32.gmra.mxu1 %vm60_vm0, %v649_v54  ;;  %v439_v57 = vpop.permute.xlu0 %438 }
 0x170   :  { %v523_v58 = vmul.f32 %v441_v60, %v1904_v3  ;;  %v522_v61 = vmul.f32 %v439_v57, %v1907_v4 }
 0x173   :  { %v569_v40 = vpop.permute.xlu1 %568  ;;  %v567_v42 = vpop.permute.xlu0 %566 }
 0x174   :  { %v651_v45 = vmul.f32 %v569_v40, %v523_v58  ;;  %v650_v63 = vmul.f32 %v567_v42, %v522_v61 }
 0x176   :  { %1475 = vmatprep.mubr.msk.f32.mxu1 %vm60_vm0, %v650_v63 }
 0x177   :  { %v445_v0 = vpop.permute.xlu1 %444  ;;  %1476 = vmatmul.mubr.msk.f32.gmra.mxu1 %vm60_vm0, %v651_v45  ;;  %v443_v62 = vpop.permute.xlu0 %442 }
 0x178   :  { %v525_v1 = vmul.f32 %v445_v0, %v1918_v7  ;;  %v524_v2 = vmul.f32 %v443_v62, %v1921_v8 }
 0x17b   :  { %v573_v5 = vpop.permute.xlu1 %572  ;;  %v571_v6 = vpop.permute.xlu0 %570 }
 0x17c   :  { %v653_v9 = vmul.f32 %v573_v5, %v525_v1  ;;  %v652_v3 = vmul.f32 %v571_v6, %v524_v2 }
 0x17e   :  { %1478 = vmatprep.mubr.msk.f32.mxu1 %vm60_vm0, %v652_v3 }
 0x17f   :  { %v449_v4 = vpop.permute.xlu1 %448  ;;  %1479 = vmatmul.mubr.msk.f32.gmra.mxu1 %vm60_vm0, %v653_v9  ;;  %v447_v10 = vpop.permute.xlu0 %446 }
 0x180   :  { %v527_v13 = vmul.f32 %v449_v4, %v1932_v11  ;;  %v526_v47 = vmul.f32 %v447_v10, %v1935_v12 }
 0x183   :  { %v577_v14 = vpop.permute.xlu1 %576  ;;  %v575_v48 = vpop.permute.xlu0 %574 }
 0x184   :  { %v655_v17 = vmul.f32 %v577_v14, %v527_v13  ;;  %v654_v7 = vmul.f32 %v575_v48, %v526_v47 }
 0x186   :  { %1481 = vmatprep.mubr.msk.f32.mxu1 %vm60_vm0, %v654_v7 }
 0x187   :  { %v453_v8 = vpop.permute.xlu1 %452  ;;  %1482 = vmatmul.mubr.msk.f32.gmra.mxu1 %vm60_vm0, %v655_v17  ;;  %v451_v18 = vpop.permute.xlu0 %450 }
 0x188   :  { %v529_v21 = vmul.f32 %v453_v8, %v1946_v15  ;;  %v528_v22 = vmul.f32 %v451_v18, %v1949_v16 }
 0x18b   :  { %v581_v25 = vpop.permute.xlu1 %580  ;;  %v579_v26 = vpop.permute.xlu0 %578 }
 0x18c   :  { %v657_v29 = vmul.f32 %v581_v25, %v529_v21  ;;  %v656_v11 = vmul.f32 %v579_v26, %v528_v22 }
 0x18e   :  { %1484 = vmatprep.mubr.msk.f32.mxu1 %vm60_vm0, %v656_v11 }
 0x18f   :  { %v457_v12 = vpop.permute.xlu1 %456  ;;  %1485 = vmatmul.mubr.msk.f32.gmra.mxu1 %vm60_vm0, %v657_v29  ;;  %v455_v51 = vpop.permute.xlu0 %454 }
 0x190   :  { %v531_v52 = vmul.f32 %v457_v12, %v1960_v19  ;;  %v530_v30 = vmul.f32 %v455_v51, %v1963_v20 }
 0x193   :  { %v585_v33 = vpop.permute.xlu1 %584  ;;  %v583_v34 = vpop.permute.xlu0 %582 }
 0x194   :  { %v659_v37 = vmul.f32 %v585_v33, %v531_v52  ;;  %v658_v15 = vmul.f32 %v583_v34, %v530_v30 }
 0x196   :  { %1487 = vmatprep.mubr.msk.f32.mxu1 %vm60_vm0, %v658_v15 }
 0x197   :  { %v461_v16 = vpop.permute.xlu1 %460  ;;  %1488 = vmatmul.mubr.msk.f32.gmra.mxu1 %vm60_vm0, %v659_v37  ;;  %v459_v38 = vpop.permute.xlu0 %458 }
 0x198   :  { %v533_v39 = vmul.f32 %v461_v16, %v1974_v23  ;;  %v532_v55 = vmul.f32 %v459_v38, %v1977_v24 }
 0x19b   :  { %v589_v56 = vpop.permute.xlu1 %588  ;;  %v587_v41 = vpop.permute.xlu0 %586 }
 0x19c   :  { %v661_v46 = vmul.f32 %v589_v56, %v533_v39  ;;  %v660_v19 = vmul.f32 %v587_v41, %v532_v55 }
 0x19e   :  { %1490 = vmatprep.mubr.msk.f32.mxu1 %vm60_vm0, %v660_v19 }
 0x19f   :  { %v465_v20 = vpop.permute.xlu1 %464  ;;  %1491 = vmatmul.mubr.msk.f32.gmra.mxu1 %vm60_vm0, %v661_v46  ;;  %v463_v49 = vpop.permute.xlu0 %462 }
 0x1a0   :  { %v535_v50 = vmul.f32 %v465_v20, %v1988_v27  ;;  %v534_v53 = vmul.f32 %v463_v49, %v1991_v28 }
 0x1a3   :  { %v593_v54 = vpop.permute.xlu1 %592  ;;  %v591_v59 = vpop.permute.xlu0 %590 }
 0x1a4   :  { %v663_v60 = vmul.f32 %v593_v54, %v535_v50  ;;  %v662_v23 = vmul.f32 %v591_v59, %v534_v53 }
 0x1a6   :  { %1493 = vmatprep.mubr.msk.f32.mxu1 %vm60_vm0, %v662_v23 }
 0x1a7   :  { %v469_v24 = vpop.permute.xlu1 %468  ;;  %1494 = vmatmul.mubr.msk.f32.gmra.mxu1 %vm60_vm0, %v663_v60  ;;  %v467_v57 = vpop.permute.xlu0 %466 }
 0x1a8   :  { %v537_v58 = vmul.f32 %v469_v24, %v2002_v31  ;;  %v536_v61 = vmul.f32 %v467_v57, %v2005_v32 }
 0x1ab   :  { %v597_v40 = vpop.permute.xlu1 %596  ;;  %v595_v42 = vpop.permute.xlu0 %594 }
 0x1ac   :  { %v665_v45 = vmul.f32 %v597_v40, %v537_v58  ;;  %v664_v27 = vmul.f32 %v595_v42, %v536_v61 }
 0x1ae   :  { %1496 = vmatprep.mubr.msk.f32.mxu1 %vm60_vm0, %v664_v27 }
 0x1af   :  { %v473_v28 = vpop.permute.xlu1 %472  ;;  %1497 = vmatmul.mubr.msk.f32.gmra.mxu1 %vm60_vm0, %v665_v45  ;;  %v471_v63 = vpop.permute.xlu0 %470 }
 0x1b0   :  { %v539_v0 = vmul.f32 %v473_v28, %v2016_v35  ;;  %v538_v62 = vmul.f32 %v471_v63, %v2019_v36 }
 0x1b3   :  { %v601_v1 = vpop.permute.xlu1 %600  ;;  %v599_v2 = vpop.permute.xlu0 %598 }
 0x1b4   :  { %v667_v5 = vmul.f32 %v601_v1, %v539_v0  ;;  %v666_v31 = vmul.f32 %v599_v2, %v538_v62 }
 0x1b6   :  { %1499 = vmatprep.mubr.msk.f32.mxu1 %vm60_vm0, %v666_v31 }
 0x1b7   :  { %v477_v32 = vpop.permute.xlu1 %476  ;;  %1500 = vmatmul.mubr.msk.f32.gmra.mxu1 %vm60_vm0, %v667_v5  ;;  %v475_v6 = vpop.permute.xlu0 %474 }
 0x1b8   :  { %v541_v9 = vmul.f32 %v477_v32, %v2030_v43  ;;  %v540_v3 = vmul.f32 %v475_v6, %v2033_v44 }
 0x1bb   :  { %v605_v4 = vpop.permute.xlu1 %604  ;;  %v603_v10 = vpop.permute.xlu0 %602 }
 0x1bc   :  { %v669_v13 = vmul.f32 %v605_v4, %v541_v9  ;;  %v668_v35 = vmul.f32 %v603_v10, %v540_v3 }
 0x1be   :  { %1502 = vmatprep.mubr.msk.f32.mxu1 %vm60_vm0, %v668_v35 }
 0x1bf   :  { %1503 = vmatmul.mubr.msk.f32.gmra.mxu1 %vm60_vm0, %v669_v13 }
 0x20a   :  { %v1459_v36 = vpop.f32.mrf.mxu1 }
 0x20b   :  { %v1290_v47 = vmul.f32 -1.442695, %v1459_v36 }
 0x20c   :  { %v836_v14 = vpop.f32.mrf.mxu1 }
 0x20d   :  { %1507 = vpow2.f32 %v1290_v47  ;;  %v1289_v48 = vmul.f32 -1.442695, %v836_v14 }
 0x20f   :  { %1509 = vpow2.f32 %v1289_v48  ;;  %v1462_v17 = vpop.f32.mrf.mxu1 }
 0x210   :  { %v1292_v7 = vmul.f32 -1.442695, %v1462_v17 }
 0x211   :  { %v846_v8 = vpop.f32.mrf.mxu1 }
 0x212   :  { %1511 = vpow2.f32 %v1292_v7  ;;  %v1291_v43 = vmul.f32 -1.442695, %v846_v8 }
 0x214   :  { %1513 = vpow2.f32 %v1291_v43 }
 0x217   :  { %v1465_v44 = vpop.f32.mrf.mxu1 }
 0x218   :  { %v1294_v18 = vmul.f32 -1.442695, %v1465_v44 }
 0x219   :  { %v856_v21 = vpop.f32.mrf.mxu1 }
 0x21a   :  { %v1508_v22 = vpop.eup %1507  ;;  %1515 = vpow2.f32 %v1294_v18  ;;  %v1293_v25 = vmul.f32 -1.442695, %v856_v21 }
 0x21b   :  { %v1092_v26 = vadd.f32 1.0, %v1508_v22 }
 0x21c   :  { %v1510_v29 = vpop.eup %1509  ;;  %1517 = vpow2.f32 %v1293_v25 }
 0x21d   :  { %1519 = vrcp.f32 %v1092_v26  ;;  %v1091_v11 = vadd.f32 1.0, %v1510_v29 }
 0x21f   :  { %v1512_v12 = vpop.eup %1511  ;;  %1521 = vrcp.f32 %v1091_v11  ;;  %v1468_v51 = vpop.f32.mrf.mxu1 }
 0x220   :  { %v1094_v52 = vadd.f32 1.0, %v1512_v12  ;;  %v1296_v30 = vmul.f32 -1.442695, %v1468_v51 }
 0x221   :  { %v1514_v33 = vpop.eup %1513  ;;  %v866_v34 = vpop.f32.mrf.mxu1 }
 0x222   :  { %1523 = vrcp.f32 %v1094_v52  ;;  %v1093_v37 = vadd.f32 1.0, %v1514_v33  ;;  %v1295_v15 = vmul.f32 -1.442695, %v866_v34 }
 0x223   :  { %1525 = vpow2.f32 %v1296_v30 }
 0x224   :  { %1527 = vrcp.f32 %v1093_v37 }
 0x225   :  { %1529 = vpow2.f32 %v1295_v15 }
 0x227   :  { %v1516_v16 = vpop.eup %1515  ;;  %v1471_v38 = vpop.f32.mrf.mxu1 }
 0x228   :  { %v1096_v39 = vadd.f32 1.0, %v1516_v16  ;;  %v1298_v55 = vmul.f32 -1.442695, %v1471_v38 }
 0x229   :  { %v1518_v56 = vpop.eup %1517  ;;  %v876_v41 = vpop.f32.mrf.mxu1 }
 0x22a   :  { %v1520_v46 = vpop.eup %1519  ;;  %1531 = vrcp.f32 %v1096_v39  ;;  %v1095_v19 = vadd.f32 1.0, %v1518_v56  ;;  %v1297_v20 = vmul.f32 -1.442695, %v876_v41 }
 0x22b   :  { %1189 = vst.msk [vmem:[%s2239_s4 + $0x8] sm:$0xff] %vm1187_vm1, %v1520_v46  ;;  %1533 = vpow2.f32 %v1298_v55 }
 0x22c   :  { %v1522_v49 = vpop.eup %1521  ;;  %1535 = vrcp.f32 %v1095_v19 }
 0x22d   :  { %1188 = vst.msk [vmem:[%s2239_s4] sm:$0xff] %vm1187_vm1, %v1522_v49  ;;  %1537 = vpow2.f32 %v1297_v20 }
 0x22f   :  { %v1524_v50 = vpop.eup %1523  ;;  %v1474_v53 = vpop.f32.mrf.mxu1 }
 0x230   :  { %v1526_v54 = vpop.eup %1525  ;;  %1191 = vst.msk [vmem:[%s2239_s4 + $0x18] sm:$0xff] %vm1187_vm1, %v1524_v50  ;;  %v1300_v59 = vmul.f32 -1.442695, %v1474_v53 }
 0x231   :  { %v1528_v60 = vpop.eup %1527  ;;  %v1098_v23 = vadd.f32 1.0, %v1526_v54  ;;  %v886_v24 = vpop.f32.mrf.mxu1 }
 0x232   :  { %v1530_v57 = vpop.eup %1529  ;;  %1190 = vst.msk [vmem:[%s2239_s4 + $0x10] sm:$0xff] %vm1187_vm1, %v1528_v60  ;;  %1539 = vpow2.f32 %v1300_v59  ;;  %v1299_v58 = vmul.f32 -1.442695, %v886_v24 }
 0x233   :  { %1541 = vrcp.f32 %v1098_v23  ;;  %v1097_v61 = vadd.f32 1.0, %v1530_v57 }
 0x234   :  { %1543 = vpow2.f32 %v1299_v58 }
 0x235   :  { %1545 = vrcp.f32 %v1097_v61 }
 0x237   :  { %v1532_v40 = vpop.eup %1531  ;;  %v1477_v42 = vpop.f32.mrf.mxu1 }
 0x238   :  { %v1534_v45 = vpop.eup %1533  ;;  %1193 = vst.msk [vmem:[%s2239_s4 + $0x28] sm:$0xff] %vm1187_vm1, %v1532_v40  ;;  %v1302_v27 = vmul.f32 -1.442695, %v1477_v42 }
 0x239   :  { %v1536_v28 = vpop.eup %1535  ;;  %v1100_v63 = vadd.f32 1.0, %v1534_v45  ;;  %v896_v0 = vpop.f32.mrf.mxu1 }
 0x23a   :  { %v1538_v62 = vpop.eup %1537  ;;  %1192 = vst.msk [vmem:[%s2239_s4 + $0x20] sm:$0xff] %vm1187_vm1, %v1536_v28  ;;  %1547 = vpow2.f32 %v1302_v27  ;;  %v1301_v1 = vmul.f32 -1.442695, %v896_v0 }
 0x23b   :  { %1549 = vrcp.f32 %v1100_v63  ;;  %v1099_v2 = vadd.f32 1.0, %v1538_v62 }
 0x23c   :  { %1551 = vpow2.f32 %v1301_v1 }
 0x23d   :  { %1553 = vrcp.f32 %v1099_v2 }
 0x23f   :  { %v1540_v5 = vpop.eup %1539  ;;  %v1480_v31 = vpop.f32.mrf.mxu1 }
 0x240   :  { %v1542_v32 = vpop.eup %1541  ;;  %v1102_v6 = vadd.f32 1.0, %v1540_v5  ;;  %v1304_v9 = vmul.f32 -1.442695, %v1480_v31 }
 0x241   :  { %v1544_v3 = vpop.eup %1543  ;;  %1195 = vst.msk [vmem:[%s2239_s4 + $0x38] sm:$0xff] %vm1187_vm1, %v1542_v32  ;;  %v906_v4 = vpop.f32.mrf.mxu1 }
 0x242   :  { %v1546_v10 = vpop.eup %1545  ;;  %1555 = vrcp.f32 %v1102_v6  ;;  %v1101_v13 = vadd.f32 1.0, %v1544_v3  ;;  %v1303_v35 = vmul.f32 -1.442695, %v906_v4 }
 0x243   :  { %1194 = vst.msk [vmem:[%s2239_s4 + $0x30] sm:$0xff] %vm1187_vm1, %v1546_v10  ;;  %1557 = vpow2.f32 %v1304_v9 }
 0x244   :  { %1559 = vrcp.f32 %v1101_v13 }
 0x245   :  { %1561 = vpow2.f32 %v1303_v35 }
 0x247   :  { %v1548_v36 = vpop.eup %1547  ;;  %v1483_v47 = vpop.f32.mrf.mxu1 }
 0x248   :  { %v1550_v14 = vpop.eup %1549  ;;  %v1104_v48 = vadd.f32 1.0, %v1548_v36  ;;  %v1306_v17 = vmul.f32 -1.442695, %v1483_v47 }
 0x249   :  { %v1552_v7 = vpop.eup %1551  ;;  %1197 = vst.msk [vmem:[%s2239_s4 + $0x48] sm:$0xff] %vm1187_vm1, %v1550_v14  ;;  %v916_v8 = vpop.f32.mrf.mxu1 }
 0x24a   :  { %v1554_v43 = vpop.eup %1553  ;;  %1563 = vrcp.f32 %v1104_v48  ;;  %v1103_v44 = vadd.f32 1.0, %v1552_v7  ;;  %v1305_v18 = vmul.f32 -1.442695, %v916_v8 }
 0x24b   :  { %1196 = vst.msk [vmem:[%s2239_s4 + $0x40] sm:$0xff] %vm1187_vm1, %v1554_v43  ;;  %1565 = vpow2.f32 %v1306_v17 }
 0x24c   :  { %1567 = vrcp.f32 %v1103_v44 }
 0x24d   :  { %1569 = vpow2.f32 %v1305_v18 }
 0x24f   :  { %v1556_v21 = vpop.eup %1555  ;;  %v1486_v22 = vpop.f32.mrf.mxu1 }
 0x250   :  { %v1558_v25 = vpop.eup %1557  ;;  %1199 = vst.msk [vmem:[%s2239_s4 + $0x58] sm:$0xff] %vm1187_vm1, %v1556_v21  ;;  %v1308_v26 = vmul.f32 -1.442695, %v1486_v22 }
 0x251   :  { %v1560_v29 = vpop.eup %1559  ;;  %v1106_v11 = vadd.f32 1.0, %v1558_v25  ;;  %v926_v12 = vpop.f32.mrf.mxu1 }
 0x252   :  { %v1562_v51 = vpop.eup %1561  ;;  %1198 = vst.msk [vmem:[%s2239_s4 + $0x50] sm:$0xff] %vm1187_vm1, %v1560_v29  ;;  %1571 = vpow2.f32 %v1308_v26  ;;  %v1307_v52 = vmul.f32 -1.442695, %v926_v12 }
 0x253   :  { %1573 = vrcp.f32 %v1106_v11  ;;  %v1105_v30 = vadd.f32 1.0, %v1562_v51 }
 0x254   :  { %1575 = vpow2.f32 %v1307_v52 }
 0x255   :  { %1577 = vrcp.f32 %v1105_v30 }
 0x257   :  { %v1564_v33 = vpop.eup %1563  ;;  %v1489_v34 = vpop.f32.mrf.mxu1 }
 0x258   :  { %v1566_v37 = vpop.eup %1565  ;;  %1201 = vst.msk [vmem:[%s2239_s4 + $0x68] sm:$0xff] %vm1187_vm1, %v1564_v33  ;;  %v1310_v15 = vmul.f32 -1.442695, %v1489_v34 }
 0x259   :  { %v1568_v16 = vpop.eup %1567  ;;  %v1108_v38 = vadd.f32 1.0, %v1566_v37  ;;  %v936_v39 = vpop.f32.mrf.mxu1 }
 0x25a   :  { %v1570_v55 = vpop.eup %1569  ;;  %1200 = vst.msk [vmem:[%s2239_s4 + $0x60] sm:$0xff] %vm1187_vm1, %v1568_v16  ;;  %1579 = vpow2.f32 %v1310_v15  ;;  %v1309_v56 = vmul.f32 -1.442695, %v936_v39 }
 0x25b   :  { %1581 = vrcp.f32 %v1108_v38  ;;  %v1107_v41 = vadd.f32 1.0, %v1570_v55 }
 0x25c   :  { %1583 = vpow2.f32 %v1309_v56 }
 0x25d   :  { %1585 = vrcp.f32 %v1107_v41 }
 0x25f   :  { %v1572_v46 = vpop.eup %1571  ;;  %v1492_v19 = vpop.f32.mrf.mxu1 }
 0x260   :  { %v1574_v20 = vpop.eup %1573  ;;  %v1110_v49 = vadd.f32 1.0, %v1572_v46  ;;  %v1312_v50 = vmul.f32 -1.442695, %v1492_v19 }
 0x261   :  { %v1576_v53 = vpop.eup %1575  ;;  %1203 = vst.msk [vmem:[%s2239_s4 + $0x78] sm:$0xff] %vm1187_vm1, %v1574_v20  ;;  %v946_v54 = vpop.f32.mrf.mxu1 }
 0x262   :  { %v1578_v59 = vpop.eup %1577  ;;  %1587 = vrcp.f32 %v1110_v49  ;;  %v1109_v60 = vadd.f32 1.0, %v1576_v53  ;;  %v1311_v23 = vmul.f32 -1.442695, %v946_v54 }
 0x263   :  { %1202 = vst.msk [vmem:[%s2239_s4 + $0x70] sm:$0xff] %vm1187_vm1, %v1578_v59  ;;  %1589 = vpow2.f32 %v1312_v50 }
 0x264   :  { %1591 = vrcp.f32 %v1109_v60 }
 0x265   :  { %1593 = vpow2.f32 %v1311_v23 }
 0x267   :  { %v1580_v24 = vpop.eup %1579  ;;  %v1495_v57 = vpop.f32.mrf.mxu1 }
 0x268   :  { %v1582_v58 = vpop.eup %1581  ;;  %v1112_v61 = vadd.f32 1.0, %v1580_v24  ;;  %v1314_v40 = vmul.f32 -1.442695, %v1495_v57 }
 0x269   :  { %v1584_v42 = vpop.eup %1583  ;;  %1205 = vst.msk [vmem:[%s2239_s4 + $0x88] sm:$0xff] %vm1187_vm1, %v1582_v58  ;;  %v956_v45 = vpop.f32.mrf.mxu1 }
 0x26a   :  { %v1586_v27 = vpop.eup %1585  ;;  %1595 = vrcp.f32 %v1112_v61  ;;  %v1111_v28 = vadd.f32 1.0, %v1584_v42  ;;  %v1313_v63 = vmul.f32 -1.442695, %v956_v45 }
 0x26b   :  { %1204 = vst.msk [vmem:[%s2239_s4 + $0x80] sm:$0xff] %vm1187_vm1, %v1586_v27  ;;  %1597 = vpow2.f32 %v1314_v40 }
 0x26c   :  { %1599 = vrcp.f32 %v1111_v28 }
 0x26d   :  { %1601 = vpow2.f32 %v1313_v63 }
 0x26f   :  { %v1588_v0 = vpop.eup %1587  ;;  %v1498_v62 = vpop.f32.mrf.mxu1 }
 0x270   :  { %v1590_v1 = vpop.eup %1589  ;;  %1207 = vst.msk [vmem:[%s2239_s4 + $0x98] sm:$0xff] %vm1187_vm1, %v1588_v0  ;;  %v1316_v2 = vmul.f32 -1.442695, %v1498_v62 }
 0x271   :  { %v1592_v5 = vpop.eup %1591  ;;  %v1114_v31 = vadd.f32 1.0, %v1590_v1  ;;  %v966_v32 = vpop.f32.mrf.mxu1 }
 0x272   :  { %v1594_v6 = vpop.eup %1593  ;;  %1206 = vst.msk [vmem:[%s2239_s4 + $0x90] sm:$0xff] %vm1187_vm1, %v1592_v5  ;;  %1603 = vpow2.f32 %v1316_v2  ;;  %v1315_v9 = vmul.f32 -1.442695, %v966_v32 }
 0x273   :  { %1605 = vrcp.f32 %v1114_v31  ;;  %v1113_v3 = vadd.f32 1.0, %v1594_v6 }
 0x274   :  { %1607 = vpow2.f32 %v1315_v9 }
 0x275   :  { %1609 = vrcp.f32 %v1113_v3 }
 0x277   :  { %v1596_v4 = vpop.eup %1595  ;;  %v1501_v10 = vpop.f32.mrf.mxu1 }
 0x278   :  { %v1598_v13 = vpop.eup %1597  ;;  %1209 = vst.msk [vmem:[%s2239_s4 + $0xa8] sm:$0xff] %vm1187_vm1, %v1596_v4  ;;  %v1318_v35 = vmul.f32 -1.442695, %v1501_v10 }
 0x279   :  { %v1600_v36 = vpop.eup %1599  ;;  %v1116_v47 = vadd.f32 1.0, %v1598_v13  ;;  %v976_v14 = vpop.f32.mrf.mxu1 }
 0x27a   :  { %v1602_v48 = vpop.eup %1601  ;;  %1208 = vst.msk [vmem:[%s2239_s4 + $0xa0] sm:$0xff] %vm1187_vm1, %v1600_v36  ;;  %1611 = vpow2.f32 %v1318_v35  ;;  %v1317_v17 = vmul.f32 -1.442695, %v976_v14 }
 0x27b   :  { %1613 = vrcp.f32 %v1116_v47  ;;  %v1115_v7 = vadd.f32 1.0, %v1602_v48 }
 0x27c   :  { %1615 = vpow2.f32 %v1317_v17 }
 0x27d   :  { %1617 = vrcp.f32 %v1115_v7 }
 0x27f   :  { %v1604_v8 = vpop.eup %1603  ;;  %v1504_v43 = vpop.f32.mrf.mxu1 }
 0x280   :  { %v1606_v44 = vpop.eup %1605  ;;  %v1118_v18 = vadd.f32 1.0, %v1604_v8  ;;  %v1320_v21 = vmul.f32 -1.442695, %v1504_v43 }
 0x281   :  { %v1608_v22 = vpop.eup %1607  ;;  %1211 = vst.msk [vmem:[%s2239_s4 + $0xb8] sm:$0xff] %vm1187_vm1, %v1606_v44  ;;  %v986_v25 = vpop.f32.mrf.mxu1 }
 0x282   :  { %v1610_v26 = vpop.eup %1609  ;;  %1619 = vrcp.f32 %v1118_v18  ;;  %v1117_v29 = vadd.f32 1.0, %v1608_v22  ;;  %v1319_v11 = vmul.f32 -1.442695, %v986_v25 }
 0x283   :  { %1210 = vst.msk [vmem:[%s2239_s4 + $0xb0] sm:$0xff] %vm1187_vm1, %v1610_v26  ;;  %1621 = vpow2.f32 %v1320_v21 }
 0x284   :  { %1623 = vrcp.f32 %v1117_v29 }
 0x285   :  { %1625 = vpow2.f32 %v1319_v11 }
 0x287   :  { %v1612_v12 = vpop.eup %1611 }
 0x288   :  { %v1614_v51 = vpop.eup %1613  ;;  %v1120_v52 = vadd.f32 1.0, %v1612_v12 }
 0x289   :  { %v1616_v30 = vpop.eup %1615  ;;  %1213 = vst.msk [vmem:[%s2239_s4 + $0xc8] sm:$0xff] %vm1187_vm1, %v1614_v51 }
 0x28a   :  { %v1618_v33 = vpop.eup %1617  ;;  %1627 = vrcp.f32 %v1120_v52  ;;  %v1119_v34 = vadd.f32 1.0, %v1616_v30 }
 0x28b   :  { %1212 = vst.msk [vmem:[%s2239_s4 + $0xc0] sm:$0xff] %vm1187_vm1, %v1618_v33 }
 0x28c   :  { %1629 = vrcp.f32 %v1119_v34 }
 0x28f   :  { %v1620_v37 = vpop.eup %1619 }
 0x290   :  { %v1622_v15 = vpop.eup %1621  ;;  %1215 = vst.msk [vmem:[%s2239_s4 + $0xd8] sm:$0xff] %vm1187_vm1, %v1620_v37 }
 0x291   :  { %v1624_v16 = vpop.eup %1623  ;;  %v1122_v38 = vadd.f32 1.0, %v1622_v15 }
 0x292   :  { %v1626_v39 = vpop.eup %1625  ;;  %1214 = vst.msk [vmem:[%s2239_s4 + $0xd0] sm:$0xff] %vm1187_vm1, %v1624_v16 }
 0x293   :  { %1631 = vrcp.f32 %v1122_v38  ;;  %v1121_v55 = vadd.f32 1.0, %v1626_v39 }
 0x295   :  { %1633 = vrcp.f32 %v1121_v55 }
 0x297   :  { %v1628_v56 = vpop.eup %1627 }
 0x298   :  { %1217 = vst.msk [vmem:[%s2239_s4 + $0xe8] sm:$0xff] %vm1187_vm1, %v1628_v56 }
 0x299   :  { %v1630_v41 = vpop.eup %1629 }
 0x29a   :  { %1216 = vst.msk [vmem:[%s2239_s4 + $0xe0] sm:$0xff] %vm1187_vm1, %v1630_v41 }
 0x2a0   :  { %v1632_v46 = vpop.eup %1631 }
 0x2a1   :  { %1219 = vst.msk [vmem:[%s2239_s4 + $0xf8] sm:$0xff] %vm1187_vm1, %v1632_v46 }
 0x2a2   :  { %v1634_v19 = vpop.eup %1633 }
 0x2a3   :  { %1218 = vst.msk [vmem:[%s2239_s4 + $0xf0] sm:$0xff] %vm1187_vm1, %v1634_v19 }

</bundles_post_ra>
